<compile_context>
chip_gen: v7x
topology: tpu7x:2x2x1
jax: 0.10.0
libtpu: 0.0.40
codegen_flags: <defaults>
</compile_context>

<pallas_src>
import jax
import jax.numpy as jnp
from jax.experimental import pallas as pl
from jax.experimental.pallas import tpu as pltpu

# ----------------------------- model sizes -----------------------------
N_CLASS = 32    # vocab / one-hot size
N_HIDDEN = 32   # RNN hidden size
BATCH = 2
T_ENC = 8
T_DEC = 8
B_PAD = 8       # pad batch to a full sublane group


# ----------------------------- Pallas kernel -----------------------------
def seq2seq_kernel(x_ref, w_ref, b_ref, out_ref):
    bp = B_PAD
    t_dec = out_ref.shape[0] // bp
    n_x = x_ref.shape[0] - bp                 # rows holding enc + dec inputs
    t_enc = n_x // bp - t_dec
    c = out_ref.shape[1]
    h_dim = (b_ref.shape[1] - c) // 2

    # --- static slices into the packed slabs ---
    w_ih_cat = w_ref[0:c, 0:2 * h_dim]              # [W_ih_e.T | W_ih_d.T]  (C, 2H)
    w_hh_e   = w_ref[0:h_dim, 2 * h_dim:3 * h_dim]  # (H, H)
    w_hh_d   = w_ref[0:h_dim, 3 * h_dim:4 * h_dim]  # (H, H)
    w_fc     = w_ref[0:h_dim, 4 * h_dim:4 * h_dim + c]   # (H, C)
    b_cat    = b_ref[:, 0:2 * h_dim]                # (1, 2H)  (b_ih+b_hh folded)
    b_fc     = b_ref[:, 2 * h_dim:2 * h_dim + c]    # (1, C)

    x_all = x_ref[0:n_x, 0:c]                       # enc rows then dec rows
    h = x_ref[n_x:n_x + bp, 0:h_dim]                # initial hidden state h0

    # --- ONE fused MXU op for both RNNs' input projections ---
    proj = (jnp.dot(x_all, w_ih_cat, preferred_element_type=jnp.float32)
            + b_cat)                                # (n_x, 2H)
    enc_proj = proj[0:t_enc * bp, 0:h_dim]          # enc rows, left half
    dec_proj = proj[t_enc * bp:n_x, h_dim:2 * h_dim]  # dec rows, right half

    # --- encoder recurrence: fully unrolled, one matmul + tanh per step ---
    for t in range(t_enc):
        h = jnp.tanh(enc_proj[t * bp:(t + 1) * bp, :]
                     + jnp.dot(h, w_hh_e, preferred_element_type=jnp.float32))

    # --- decoder recurrence: keep per-step hidden states in registers ---
    hs = []
    for t in range(t_dec):
        h = jnp.tanh(dec_proj[t * bp:(t + 1) * bp, :]
                     + jnp.dot(h, w_hh_d, preferred_element_type=jnp.float32))
        hs.append(h)
    dec_h = jnp.concatenate(hs, axis=0)             # (t_dec*bp, H), stays in vregs

    # --- single FC matmul + single full-block output store ---
    out_ref[...] = (jnp.dot(dec_h, w_fc, preferred_element_type=jnp.float32)
                    + b_fc).astype(out_ref.dtype)


# ----------------------------- wrapper -----------------------------
def seq2seq_forward(params, enc_input, enc_hidden, dec_input):
    """enc_input: (B, T_enc, C), enc_hidden: (1, B, H), dec_input: (B, T_dec, C)
    returns (T_dec, B, C) — identical to the PyTorch module's output."""
    B, t_enc, C = enc_input.shape
    t_dec = dec_input.shape[1]
    H = enc_hidden.shape[2]
    pad_b = B_PAD - B
    R = max(C, H)     # weight-slab row count
    CW = max(C, H)    # x/h0-slab column count

    # Glue (matches PyTorch's transpose(0,1)), pad batch to 8 sublanes,
    # flatten time-major to (T*Bp, C) so input projections are batched.
    enc_x = jnp.transpose(enc_input, (1, 0, 2))
    dec_x = jnp.transpose(dec_input, (1, 0, 2))
    enc_x = jnp.pad(enc_x, ((0, 0), (0, pad_b), (0, 0))).reshape(t_enc * B_PAD, C)
    dec_x = jnp.pad(dec_x, ((0, 0), (0, pad_b), (0, 0))).reshape(t_dec * B_PAD, C)
    h0 = jnp.pad(enc_hidden[0], ((0, pad_b), (0, 0)))          # (Bp, H)

    # Pack everything into 3 slabs -> 3 input DMAs + 1 output DMA.
    def padr(w, rows):
        return jnp.pad(w, ((0, rows - w.shape[0]), (0, 0)))

    x_slab = jnp.concatenate([
        jnp.pad(enc_x, ((0, 0), (0, CW - C))),
        jnp.pad(dec_x, ((0, 0), (0, CW - C))),
        jnp.pad(h0,    ((0, 0), (0, CW - H))),
    ], axis=0)                                                  # ((Te+Td)*Bp + Bp, CW)

    w_slab = jnp.concatenate([
        padr(params["enc_w_ih"].T, R), padr(params["dec_w_ih"].T, R),
        padr(params["enc_w_hh"].T, R), padr(params["dec_w_hh"].T, R),
        padr(params["fc_w"].T, R),
    ], axis=1)                                                  # (R, 4H + C)

    b_slab = jnp.concatenate([
        params["enc_b_ih"] + params["enc_b_hh"],                # b_ih + b_hh fold
        params["dec_b_ih"] + params["dec_b_hh"],
        params["fc_b"],
    ])[None, :]                                                 # (1, 2H + C)

    vmem = pl.BlockSpec(memory_space=pltpu.MemorySpace.VMEM)
    out_flat = pl.pallas_call(
        seq2seq_kernel,
        out_shape=jax.ShapeDtypeStruct((t_dec * B_PAD, C), jnp.float32),
        in_specs=[vmem, vmem, vmem],
        out_specs=vmem,
    )(x_slab, w_slab, b_slab)

    # drop padded batch rows, back to (T_dec, B, C)
    return out_flat.reshape(t_dec, B_PAD, C)[:, :B, :]


# ----------------------------- reference (pure JAX) -----------------------------
def seq2seq_reference(params, enc_input, enc_hidden, dec_input):
    enc_x = jnp.transpose(enc_input, (1, 0, 2))
    dec_x = jnp.transpose(dec_input, (1, 0, 2))
    h = enc_hidden[0]

    def rnn_step(wi, wh, bi, bh, h, x):
        return jnp.tanh(x @ wi.T + bi + h @ wh.T + bh)

    for t in range(enc_x.shape[0]):
        h = rnn_step(params["enc_w_ih"], params["enc_w_hh"],
                     params["enc_b_ih"], params["enc_b_hh"], h, enc_x[t])
    outs = []
    for t in range(dec_x.shape[0]):
        h = rnn_step(params["dec_w_ih"], params["dec_w_hh"],
                     params["dec_b_ih"], params["dec_b_hh"], h, dec_x[t])
        outs.append(h @ params["fc_w"].T + params["fc_b"])
    return jnp.stack(outs, axis=0)


# ----------------------------- param init -----------------------------
def init_params(key):
    ks = jax.random.split(key, 10)
    bound = 1.0 / jnp.sqrt(N_HIDDEN)

    def u(k, shape):
        return jax.random.uniform(k, shape, jnp.float32, -bound, bound)

    return {
        "enc_w_ih": u(ks[0], (N_HIDDEN, N_CLASS)),
        "enc_w_hh": u(ks[1], (N_HIDDEN, N_HIDDEN)),
        "enc_b_ih": u(ks[2], (N_HIDDEN,)),
        "enc_b_hh": u(ks[3], (N_HIDDEN,)),
        "dec_w_ih": u(ks[4], (N_HIDDEN, N_CLASS)),
        "dec_w_hh": u(ks[5], (N_HIDDEN, N_HIDDEN)),
        "dec_b_ih": u(ks[6], (N_HIDDEN,)),
        "dec_b_hh": u(ks[7], (N_HIDDEN,)),
        "fc_w": u(ks[8], (N_CLASS, N_HIDDEN)),
        "fc_b": u(ks[9], (N_CLASS,)),
    }


if __name__ == "__main__":
    key = jax.random.PRNGKey(0)
    kp, k1, k2, k3 = jax.random.split(key, 4)

    params = init_params(kp)
    enc_input = jax.random.normal(k1, (BATCH, T_ENC, N_CLASS), jnp.float32)
    dec_input = jax.random.normal(k2, (BATCH, T_DEC, N_CLASS), jnp.float32)
    enc_hidden = jax.random.normal(k3, (1, BATCH, N_HIDDEN), jnp.float32)

    out = seq2seq_forward(params, enc_input, enc_hidden, dec_input)
    out = jax.block_until_ready(out)

    ref = seq2seq_reference(params, enc_input, enc_hidden, dec_input)
    assert out.shape == (T_DEC, BATCH, N_CLASS), out.shape
    assert jnp.allclose(out, ref, atol=1e-4, rtol=1e-4), "mismatch vs reference"

    print("KERNEL_OK")
</pallas_src>

<mosaic_0001>
module attributes {stable_mosaic.version = 11 : i64} {
  func.func @seq2seq_kernel(%arg0: memref<136x32xf32, #tpu.memory_space<vmem>>, %arg1: memref<32x160xf32, #tpu.memory_space<vmem>>, %arg2: memref<1x96xf32, #tpu.memory_space<vmem>>, %arg3: memref<64x32xf32, #tpu.memory_space<vmem>>) attributes {dimension_semantics = [], scalar_prefetch = 0 : i64, scratch_operands = 0 : i64, tpu.core_type = #tpu.core_type<tc>} {
    %c0 = arith.constant 0 : index
    %c0_0 = arith.constant 0 : index
    %0 = vector.load %arg1[%c0, %c0_0] : memref<32x160xf32, #tpu.memory_space<vmem>>, vector<32x64xf32>
    %c0_1 = arith.constant 0 : index
    %c64 = arith.constant 64 : index
    %1 = vector.load %arg1[%c0_1, %c64] : memref<32x160xf32, #tpu.memory_space<vmem>>, vector<32x32xf32>
    %c0_2 = arith.constant 0 : index
    %c96 = arith.constant 96 : index
    %2 = vector.load %arg1[%c0_2, %c96] : memref<32x160xf32, #tpu.memory_space<vmem>>, vector<32x32xf32>
    %c0_3 = arith.constant 0 : index
    %c128 = arith.constant 128 : index
    %3 = vector.load %arg1[%c0_3, %c128] : memref<32x160xf32, #tpu.memory_space<vmem>>, vector<32x32xf32>
    %c0_4 = arith.constant 0 : index
    %c0_5 = arith.constant 0 : index
    %4 = vector.load %arg2[%c0_4, %c0_5] : memref<1x96xf32, #tpu.memory_space<vmem>>, vector<1x64xf32>
    %c0_6 = arith.constant 0 : index
    %c64_7 = arith.constant 64 : index
    %5 = vector.load %arg2[%c0_6, %c64_7] : memref<1x96xf32, #tpu.memory_space<vmem>>, vector<1x32xf32>
    %c0_8 = arith.constant 0 : index
    %c0_9 = arith.constant 0 : index
    %6 = vector.load %arg0[%c0_8, %c0_9] : memref<136x32xf32, #tpu.memory_space<vmem>>, vector<128x32xf32>
    %c128_10 = arith.constant 128 : index
    %c0_11 = arith.constant 0 : index
    %7 = vector.load %arg0[%c128_10, %c0_11] : memref<136x32xf32, #tpu.memory_space<vmem>>, vector<8x32xf32>
    %cst = arith.constant dense<0.000000e+00> : vector<128x64xf32>
    %8 = tpu.matmul %6, %0, %cst {dimension_numbers = #tpu.dot_dimension_numbers<[1], [0], [0], [1], [0, 0, 1, 1], [], []>} : vector<128x32xf32>, vector<32x64xf32>, vector<128x64xf32> -> vector<128x64xf32>
    %9 = vector.broadcast %4 : vector<1x64xf32> to vector<128x64xf32>
    %10 = arith.addf %8, %9 : vector<128x64xf32>
    %11 = vector.extract_strided_slice %10 {offsets = [0, 0], sizes = [64, 32], strides = [1, 1]} : vector<128x64xf32> to vector<64x32xf32>
    %12 = vector.extract_strided_slice %10 {offsets = [64, 32], sizes = [64, 32], strides = [1, 1]} : vector<128x64xf32> to vector<64x32xf32>
    %13 = vector.extract_strided_slice %11 {offsets = [0, 0], sizes = [8, 32], strides = [1, 1]} : vector<64x32xf32> to vector<8x32xf32>
    %cst_12 = arith.constant dense<0.000000e+00> : vector<8x32xf32>
    %14 = tpu.matmul %7, %1, %cst_12 {dimension_numbers = #tpu.dot_dimension_numbers<[1], [0], [0], [1], [0, 0, 1, 1], [], []>} : vector<8x32xf32>, vector<32x32xf32>, vector<8x32xf32> -> vector<8x32xf32>
    %15 = arith.addf %13, %14 : vector<8x32xf32>
    %16 = math.tanh %15 : vector<8x32xf32>
    %17 = vector.extract_strided_slice %11 {offsets = [8, 0], sizes = [8, 32], strides = [1, 1]} : vector<64x32xf32> to vector<8x32xf32>
    %cst_13 = arith.constant dense<0.000000e+00> : vector<8x32xf32>
    %18 = tpu.matmul %16, %1, %cst_13 {dimension_numbers = #tpu.dot_dimension_numbers<[1], [0], [0], [1], [0, 0, 1, 1], [], []>} : vector<8x32xf32>, vector<32x32xf32>, vector<8x32xf32> -> vector<8x32xf32>
    %19 = arith.addf %17, %18 : vector<8x32xf32>
    %20 = math.tanh %19 : vector<8x32xf32>
    %21 = vector.extract_strided_slice %11 {offsets = [16, 0], sizes = [8, 32], strides = [1, 1]} : vector<64x32xf32> to vector<8x32xf32>
    %cst_14 = arith.constant dense<0.000000e+00> : vector<8x32xf32>
    %22 = tpu.matmul %20, %1, %cst_14 {dimension_numbers = #tpu.dot_dimension_numbers<[1], [0], [0], [1], [0, 0, 1, 1], [], []>} : vector<8x32xf32>, vector<32x32xf32>, vector<8x32xf32> -> vector<8x32xf32>
    %23 = arith.addf %21, %22 : vector<8x32xf32>
    %24 = math.tanh %23 : vector<8x32xf32>
    %25 = vector.extract_strided_slice %11 {offsets = [24, 0], sizes = [8, 32], strides = [1, 1]} : vector<64x32xf32> to vector<8x32xf32>
    %cst_15 = arith.constant dense<0.000000e+00> : vector<8x32xf32>
    %26 = tpu.matmul %24, %1, %cst_15 {dimension_numbers = #tpu.dot_dimension_numbers<[1], [0], [0], [1], [0, 0, 1, 1], [], []>} : vector<8x32xf32>, vector<32x32xf32>, vector<8x32xf32> -> vector<8x32xf32>
    %27 = arith.addf %25, %26 : vector<8x32xf32>
    %28 = math.tanh %27 : vector<8x32xf32>
    %29 = vector.extract_strided_slice %11 {offsets = [32, 0], sizes = [8, 32], strides = [1, 1]} : vector<64x32xf32> to vector<8x32xf32>
    %cst_16 = arith.constant dense<0.000000e+00> : vector<8x32xf32>
    %30 = tpu.matmul %28, %1, %cst_16 {dimension_numbers = #tpu.dot_dimension_numbers<[1], [0], [0], [1], [0, 0, 1, 1], [], []>} : vector<8x32xf32>, vector<32x32xf32>, vector<8x32xf32> -> vector<8x32xf32>
    %31 = arith.addf %29, %30 : vector<8x32xf32>
    %32 = math.tanh %31 : vector<8x32xf32>
    %33 = vector.extract_strided_slice %11 {offsets = [40, 0], sizes = [8, 32], strides = [1, 1]} : vector<64x32xf32> to vector<8x32xf32>
    %cst_17 = arith.constant dense<0.000000e+00> : vector<8x32xf32>
    %34 = tpu.matmul %32, %1, %cst_17 {dimension_numbers = #tpu.dot_dimension_numbers<[1], [0], [0], [1], [0, 0, 1, 1], [], []>} : vector<8x32xf32>, vector<32x32xf32>, vector<8x32xf32> -> vector<8x32xf32>
    %35 = arith.addf %33, %34 : vector<8x32xf32>
    %36 = math.tanh %35 : vector<8x32xf32>
    %37 = vector.extract_strided_slice %11 {offsets = [48, 0], sizes = [8, 32], strides = [1, 1]} : vector<64x32xf32> to vector<8x32xf32>
    %cst_18 = arith.constant dense<0.000000e+00> : vector<8x32xf32>
    %38 = tpu.matmul %36, %1, %cst_18 {dimension_numbers = #tpu.dot_dimension_numbers<[1], [0], [0], [1], [0, 0, 1, 1], [], []>} : vector<8x32xf32>, vector<32x32xf32>, vector<8x32xf32> -> vector<8x32xf32>
    %39 = arith.addf %37, %38 : vector<8x32xf32>
    %40 = math.tanh %39 : vector<8x32xf32>
    %41 = vector.extract_strided_slice %11 {offsets = [56, 0], sizes = [8, 32], strides = [1, 1]} : vector<64x32xf32> to vector<8x32xf32>
    %cst_19 = arith.constant dense<0.000000e+00> : vector<8x32xf32>
    %42 = tpu.matmul %40, %1, %cst_19 {dimension_numbers = #tpu.dot_dimension_numbers<[1], [0], [0], [1], [0, 0, 1, 1], [], []>} : vector<8x32xf32>, vector<32x32xf32>, vector<8x32xf32> -> vector<8x32xf32>
    %43 = arith.addf %41, %42 : vector<8x32xf32>
    %44 = math.tanh %43 : vector<8x32xf32>
    %45 = vector.extract_strided_slice %12 {offsets = [0, 0], sizes = [8, 32], strides = [1, 1]} : vector<64x32xf32> to vector<8x32xf32>
    %cst_20 = arith.constant dense<0.000000e+00> : vector<8x32xf32>
    %46 = tpu.matmul %44, %2, %cst_20 {dimension_numbers = #tpu.dot_dimension_numbers<[1], [0], [0], [1], [0, 0, 1, 1], [], []>} : vector<8x32xf32>, vector<32x32xf32>, vector<8x32xf32> -> vector<8x32xf32>
    %47 = arith.addf %45, %46 : vector<8x32xf32>
    %48 = math.tanh %47 : vector<8x32xf32>
    %49 = vector.extract_strided_slice %12 {offsets = [8, 0], sizes = [8, 32], strides = [1, 1]} : vector<64x32xf32> to vector<8x32xf32>
    %cst_21 = arith.constant dense<0.000000e+00> : vector<8x32xf32>
    %50 = tpu.matmul %48, %2, %cst_21 {dimension_numbers = #tpu.dot_dimension_numbers<[1], [0], [0], [1], [0, 0, 1, 1], [], []>} : vector<8x32xf32>, vector<32x32xf32>, vector<8x32xf32> -> vector<8x32xf32>
    %51 = arith.addf %49, %50 : vector<8x32xf32>
    %52 = math.tanh %51 : vector<8x32xf32>
    %53 = vector.extract_strided_slice %12 {offsets = [16, 0], sizes = [8, 32], strides = [1, 1]} : vector<64x32xf32> to vector<8x32xf32>
    %cst_22 = arith.constant dense<0.000000e+00> : vector<8x32xf32>
    %54 = tpu.matmul %52, %2, %cst_22 {dimension_numbers = #tpu.dot_dimension_numbers<[1], [0], [0], [1], [0, 0, 1, 1], [], []>} : vector<8x32xf32>, vector<32x32xf32>, vector<8x32xf32> -> vector<8x32xf32>
    %55 = arith.addf %53, %54 : vector<8x32xf32>
    %56 = math.tanh %55 : vector<8x32xf32>
    %57 = vector.extract_strided_slice %12 {offsets = [24, 0], sizes = [8, 32], strides = [1, 1]} : vector<64x32xf32> to vector<8x32xf32>
    %cst_23 = arith.constant dense<0.000000e+00> : vector<8x32xf32>
    %58 = tpu.matmul %56, %2, %cst_23 {dimension_numbers = #tpu.dot_dimension_numbers<[1], [0], [0], [1], [0, 0, 1, 1], [], []>} : vector<8x32xf32>, vector<32x32xf32>, vector<8x32xf32> -> vector<8x32xf32>
    %59 = arith.addf %57, %58 : vector<8x32xf32>
    %60 = math.tanh %59 : vector<8x32xf32>
    %61 = vector.extract_strided_slice %12 {offsets = [32, 0], sizes = [8, 32], strides = [1, 1]} : vector<64x32xf32> to vector<8x32xf32>
    %cst_24 = arith.constant dense<0.000000e+00> : vector<8x32xf32>
    %62 = tpu.matmul %60, %2, %cst_24 {dimension_numbers = #tpu.dot_dimension_numbers<[1], [0], [0], [1], [0, 0, 1, 1], [], []>} : vector<8x32xf32>, vector<32x32xf32>, vector<8x32xf32> -> vector<8x32xf32>
    %63 = arith.addf %61, %62 : vector<8x32xf32>
    %64 = math.tanh %63 : vector<8x32xf32>
    %65 = vector.extract_strided_slice %12 {offsets = [40, 0], sizes = [8, 32], strides = [1, 1]} : vector<64x32xf32> to vector<8x32xf32>
    %cst_25 = arith.constant dense<0.000000e+00> : vector<8x32xf32>
    %66 = tpu.matmul %64, %2, %cst_25 {dimension_numbers = #tpu.dot_dimension_numbers<[1], [0], [0], [1], [0, 0, 1, 1], [], []>} : vector<8x32xf32>, vector<32x32xf32>, vector<8x32xf32> -> vector<8x32xf32>
    %67 = arith.addf %65, %66 : vector<8x32xf32>
    %68 = math.tanh %67 : vector<8x32xf32>
    %69 = vector.extract_strided_slice %12 {offsets = [48, 0], sizes = [8, 32], strides = [1, 1]} : vector<64x32xf32> to vector<8x32xf32>
    %cst_26 = arith.constant dense<0.000000e+00> : vector<8x32xf32>
    %70 = tpu.matmul %68, %2, %cst_26 {dimension_numbers = #tpu.dot_dimension_numbers<[1], [0], [0], [1], [0, 0, 1, 1], [], []>} : vector<8x32xf32>, vector<32x32xf32>, vector<8x32xf32> -> vector<8x32xf32>
    %71 = arith.addf %69, %70 : vector<8x32xf32>
    %72 = math.tanh %71 : vector<8x32xf32>
    %73 = vector.extract_strided_slice %12 {offsets = [56, 0], sizes = [8, 32], strides = [1, 1]} : vector<64x32xf32> to vector<8x32xf32>
    %cst_27 = arith.constant dense<0.000000e+00> : vector<8x32xf32>
    %74 = tpu.matmul %72, %2, %cst_27 {dimension_numbers = #tpu.dot_dimension_numbers<[1], [0], [0], [1], [0, 0, 1, 1], [], []>} : vector<8x32xf32>, vector<32x32xf32>, vector<8x32xf32> -> vector<8x32xf32>
    %75 = arith.addf %73, %74 : vector<8x32xf32>
    %76 = math.tanh %75 : vector<8x32xf32>
    %77 = tpu.concatenate %48, %52, %56, %60, %64, %68, %72, %76 in 0 : vector<8x32xf32>, vector<8x32xf32>, vector<8x32xf32>, vector<8x32xf32>, vector<8x32xf32>, vector<8x32xf32>, vector<8x32xf32>, vector<8x32xf32> -> vector<64x32xf32>
    %cst_28 = arith.constant dense<0.000000e+00> : vector<64x32xf32>
    %78 = tpu.matmul %77, %3, %cst_28 {dimension_numbers = #tpu.dot_dimension_numbers<[1], [0], [0], [1], [0, 0, 1, 1], [], []>} : vector<64x32xf32>, vector<32x32xf32>, vector<64x32xf32> -> vector<64x32xf32>
    %79 = vector.broadcast %5 : vector<1x32xf32> to vector<64x32xf32>
    %80 = arith.addf %78, %79 : vector<64x32xf32>
    %c0_29 = arith.constant 0 : index
    %c0_30 = arith.constant 0 : index
    %81 = vector.load %arg3[%c0_29, %c0_30] : memref<64x32xf32, #tpu.memory_space<vmem>>, vector<64x32xf32>
    tpu.vector_store %arg3[%c0_29, %c0_30], %80 {strides = array<i32>} : memref<64x32xf32, #tpu.memory_space<vmem>>, vector<64x32xf32>,
    return
  }
}

</mosaic_0001>

<bundles_post_ra>
// kernel: tpu_custom_call.1
= control target key start
LH: loop header
LB: loop body
LE: loop exit
PB: predicated region body
PF: predicated region fallthrough
CT: control target
= control target key end

     0   :  { %vm46_vm0 = vcmask 261120   ;;  %s2194_s24 = smov 64   ;;  %v2195_v12 = vmov 0.0|0.0   ;;  %vm2196_vm1 = vmmov 0   ;;  %v2197_v15 = vmov 0.0   ;;  %s2199_s30 = smov 96   ;;  %s2554_s1 = inlined_call_operand.vmem [shape: f32[32,160], index: 1, kind: input, shape index: {}]   ;;  %s2555_s0 = inlined_call_operand.vmem [shape: f32[136,32], index: 0, kind: input, shape index: {}]   ;;  %s2556_s2 = inlined_call_operand.vmem [shape: f32[1,96], index: 2, kind: input, shape index: {}]   ;;  %s2557_s3 = inlined_call_operand.vmem [shape: f32[64,32], index: 3, kind: output, shape index: {}]  }
   0x1   :  { %v14_v0 = vld [vmem:[%s2554_s1] sm:$0xff]  ;;  %v15_v1 = vld [vmem:[%s2554_s1 + $0x10] sm:$0xff]  ;;  %v24_v10 = vld [vmem:[%s2555_s0 + $0x8] sm:$0xff] }
   0x2   :  { %v16_v2 = vld [vmem:[%s2554_s1 + $0x20] sm:$0xff]  ;;  %v2229_v3 = vpack.i.bf16 %v15_v1, %v14_v0  ;;  %v2020_v4 = vpack.c.bf16 %v15_v1, %v14_v0  ;;  %v17_v5 = vld [vmem:[%s2554_s1 + $0x30] sm:$0xff]  ;;  %v36_v11 = vld [vmem:[%s2555_s0 + $0x68] sm:$0xff] }
   0x3   :  { %v35_v6 = vld [vmem:[%s2555_s0 + $0x60] sm:$0xff]  ;;  %v2024_v8 = vpack.c.bf16 %v17_v5, %v16_v2  ;;  %v2244_v9 = vpack.i.bf16 %v17_v5, %v16_v2  ;;  %v37_v13 = vld [vmem:[%s2555_s0 + $0x70] sm:$0xff]  ;;  %v38_v14 = vld [vmem:[%s2555_s0 + $0x78] sm:$0xff] }
   0x4   :  { %v23_v7 = vld [vmem:[%s2555_s0] sm:$0xff]  ;;  %1818 = vmatprep.mubr.msk.f32.mxu1 %vm46_vm0, %v35_v6  ;;  %2143 = vrot.lane.b32.xlu0 %v2229_v3, %s2194_s24  ;;  %v25_v37 = vld [vmem:[%s2555_s0 + $0x10] sm:$0xff]  ;;  %v26_v38 = vld [vmem:[%s2555_s0 + $0x18] sm:$0xff] }
   0x5   :  { %1800 = vmatprep.mubr.msk.f32.mxu0 %vm46_vm0, %v23_v7  ;;  %2021 = vmatprep.subr.bf16.mxu0 %v2020_v4  ;;  %v39_v24 = vld [vmem:[%s2555_s0 + $0x80] sm:$0xff]  ;;  %v28_v47 = vld [vmem:[%s2555_s0 + $0x28] sm:$0xff]  ;;  %v29_v53 = vld [vmem:[%s2555_s0 + $0x30] sm:$0xff] }
   0x6   :  { %2132 = vmatprep.subr.bf16.mxu1 %v2020_v4  ;;  %2023 = vmatpush3.bf16.msra.mxu0 %v2020_v4  ;;  %v2301_v31 = vld [vmem:[%s2556_s2] ss:$0 sm:$0xff]  ;;  %v30_v54 = vld [vmem:[%s2555_s0 + $0x38] sm:$0xff]  ;;  %v32_v56 = vld [vmem:[%s2555_s0 + $0x48] sm:$0xff] }
   0x7   :  { %2134 = vmatpush3.bf16.msra.mxu1 %v2020_v4  ;;  %2025 = vmatprep.subr.bf16.mxu0 %v2024_v8  ;;  %v27_v46 = vld [vmem:[%s2555_s0 + $0x20] sm:$0xff]  ;;  %v33_v57 = vld [vmem:[%s2555_s0 + $0x50] sm:$0xff]  ;;  %v34_v58 = vld [vmem:[%s2555_s0 + $0x58] sm:$0xff] }
   0x8   :  { %2133 = vmatprep.subr.bf16.mxu1 %v2024_v8  ;;  %2148 = vrot.lane.b32.xlu0 %v2244_v9, %s2194_s24  ;;  %v31_v55 = vld [vmem:[%s2555_s0 + $0x40] sm:$0xff]  ;;  %s2198_s0 = smov 32  }
   0x9   :  { %2153 = vrot.lane.b32.xlu1 %v2229_v3, %s2198_s0 }
   0xa   :  { %2027 = vmatpush3.bf16.msra.mxu0 %v2024_v8 }
   0xb   :  { %2135 = vmatpush3.bf16.msra.mxu1 %v2024_v8  ;;  %2052 = vmatprep.subr.bf16.mxu0 %v2195_v12 }
   0xc   :  { %2028 = vmatprep.subr.bf16.mxu1 %v2195_v12 }
   0xd   :  { %1801 = vmatmul.mubr.msk.f32.vlgmr.msra.gmra.mrb[0].mxu0 %vm46_vm0, %v24_v10  ;;  %2158 = vrot.lane.b32.xlu1 %v2244_v9, %s2198_s0 }
   0xe   :  { %1819 = vmatmul.mubr.msk.f32.vlgmr.msra.gmra.mrb[0].mxu1 %vm46_vm0, %v36_v11  ;;  %1803 = vmatprep.mubr.msk.f32.mxu0 %vm46_vm0, %v25_v37 }
   0xf   :  { %1821 = vmatprep.mubr.msk.f32.mxu1 %vm46_vm0, %v37_v13 }
  0x11   :  { %1804 = vmatmul.mubr.msk.f32.gmra.mrb[2].mxu0 %vm46_vm0, %v26_v38 }
  0x12   :  { %1822 = vmatmul.mubr.msk.f32.gmra.mrb[2].mxu1 %vm46_vm0, %v38_v14  ;;  %1806 = vmatprep.mubr.msk.f32.mxu0 %vm46_vm0, %v27_v46 }
  0x13   :  { %1832 = vmatprep.mubr.msk.f32.mxu1 %vm2196_vm1, %v2197_v15 }
  0x15   :  { %1807 = vmatmul.mubr.msk.f32.gmra.mrb[4].mxu0 %vm46_vm0, %v28_v47 }
  0x16   :  { %1809 = vmatprep.mubr.msk.f32.mxu0 %vm46_vm0, %v29_v53 }
  0x19   :  { %1810 = vmatmul.mubr.msk.f32.gmra.mrb[6].mxu0 %vm46_vm0, %v30_v54 }
  0x1a   :  { %1812 = vmatprep.mubr.msk.f32.mxu0 %vm46_vm0, %v31_v55 }
  0x1d   :  { %1813 = vmatmul.mubr.msk.f32.gmra.mrb[8].mxu0 %vm46_vm0, %v32_v56 }
  0x1e   :  { %1815 = vmatprep.mubr.msk.f32.mxu0 %vm46_vm0, %v33_v57 }
  0x21   :  { %1816 = vmatmul.mubr.msk.f32.gmra.mrb[10].mxu0 %vm46_vm0, %v34_v58 }
  0x22   :  { %1876 = vmatprep.mubr.msk.f32.mxu0 %vm2196_vm1, %v2197_v15 }
  0x76   :  { %v2144_v16 = vpop.permute.xlu0 %2143 }
  0x77   :  { %v2146_v17 = vunpack.i.h.bf16 %v2144_v16  ;;  %v2145_v18 = vunpack.i.l.bf16 %v2144_v16 }
  0x79   :  { %v2268_v19 = vpack.c.bf16 %v2146_v17, %v2145_v18 }
  0x7a   :  { %v2149_v20 = vpop.permute.xlu0 %2148 }
  0x7b   :  { %v2151_v21 = vunpack.i.h.bf16 %v2149_v20  ;;  %v2150_v22 = vunpack.i.l.bf16 %v2149_v20  ;;  %2030 = vmatpush3.bf16.msra.mxu1 %v2268_v19  ;;  %2054 = vmatpush3.bf16.msra.mxu0 %v2268_v19 }
  0x7c   :  { %2031 = vmatprep.subr.bf16.mxu1 %v2195_v12  ;;  %2055 = vmatprep.subr.bf16.mxu0 %v2195_v12 }
  0x7d   :  { %v2274_v23 = vpack.c.bf16 %v2151_v21, %v2150_v22 }
  0x7f   :  { %2033 = vmatpush3.bf16.msra.mxu1 %v2274_v23  ;;  %2057 = vmatpush3.bf16.msra.mxu0 %v2274_v23 }
  0x80   :  { %2034 = vmatprep.subr.bf16.mxu1 %v2195_v12  ;;  %2064 = vmatprep.subr.bf16.mxu0 %v2195_v12 }
  0x82   :  { %1833 = vmatmul.mubr.msk.f32.vlgmr.msra.gmra.mrb[4].mxu1 %vm46_vm0, %v39_v24 }
  0x83   :  { %2036 = vmatpush3.bf16.msra.mxu1 %v2268_v19  ;;  %1843 = vmatprep.mubr.msk.f32.mxu1 %vm2196_vm1, %v2197_v15 }
  0x84   :  { %2037 = vmatprep.subr.bf16.mxu1 %v2195_v12 }
  0x87   :  { %2039 = vmatpush3.bf16.msra.mxu1 %v2274_v23 }
  0x88   :  { %2040 = vmatprep.subr.bf16.mxu1 %v2195_v12 }
  0xe0   :  { %v1802_v25 = vpop.f32.mrb[0].mxu0 }
  0xe1   :  { %v2290_v26 = vpop.f32.mrb[0].mxu1  ;;  %v161_v27 = vpop.f32.mrb[1].mxu0  ;;  %v167_v39 = vadd.f32 %v1802_v25, %v2301_v31 }
  0xe2   :  { %v2292_v28 = vpop.f32.mrb[1].mxu1  ;;  %v162_v32 = vadd.f32 %v2301_v31, %v161_v27 }
  0xe4   :  { %v1805_v44 = vpop.f32.mrb[2].mxu0 }
  0xe5   :  { %v2294_v29 = vpop.f32.mrb[2].mxu1  ;;  %v171_v45 = vpop.f32.mrb[3].mxu0  ;;  %v177_v61 = vadd.f32 %v1805_v44, %v2301_v31 }
  0xe6   :  { %v2296_v30 = vpop.f32.mrb[3].mxu1  ;;  %v172_v48 = vadd.f32 %v2301_v31, %v171_v45 }
  0xe8   :  { %v1808_v59 = vpop.f32.mrb[4].mxu0 }
  0xe9   :  { %v181_v60 = vpop.f32.mrb[5].mxu0  ;;  %v187_v17 = vadd.f32 %v1808_v59, %v2301_v31 }
  0xea   :  { %v182_v10 = vadd.f32 %v2301_v31, %v181_v60 }
  0xec   :  { %v1811_v2 = vpop.f32.mrb[6].mxu0 }
  0xed   :  { %v191_v4 = vpop.f32.mrb[7].mxu0  ;;  %v197_v38 = vadd.f32 %v1811_v2, %v2301_v31 }
  0xf0   :  { %v2377_v5 = vpop.f32.mrb[8].mxu0 }
  0xf1   :  { %v2379_v6 = vpop.f32.mrb[9].mxu0 }
  0xf2   :  { %v202_v45 = vadd.f32 %v2301_v31, %v2379_v6 }
  0xf4   :  { %v2381_v7 = vpop.f32.mrb[10].mxu0 }
  0xf5   :  { %v2383_v8 = vpop.f32.mrb[11].mxu0  ;;  %v217_v2 = vadd.f32 %v2381_v7, %v2301_v31 }
  0xf6   :  { %v212_v59 = vadd.f32 %v2301_v31, %v2383_v8 }
 0x155   :  { %v325_v33 = vpop.f32.mrb[4].mxu1 }
 0x156   :  { %v329_v34 = vadd.f32 %v325_v33, %v162_v32  ;;  %v1834_v35 = vpop.f32.mrb[5].mxu1  ;;  %v2154_v32 = vpop.permute.xlu1 %2153 }
 0x157   :  { %v2156_v33 = vunpack.i.h.bf16 %v2154_v32 }
 0x158   :  { %2162 = vtanh.f32 %v329_v34  ;;  %v2155_v34 = vunpack.i.l.bf16 %v2154_v32 }
 0x15a   :  { %v2405_v35 = vpack.c.bf16 %v2156_v33, %v2155_v34  ;;  %v2159_v3 = vpop.permute.xlu1 %2158 }
 0x15b   :  { %v2160_v9 = vunpack.i.l.bf16 %v2159_v3 }
 0x162   :  { %v2163_v36 = vpop.eup %2162 }
 0x163   :  { %1844 = vmatmul.mubr.msk.f32.vlgmr.msra.gmra.mrb[6].mxu1 %vm46_vm0, %v2163_v36  ;;  %v2161_v36 = vunpack.i.h.bf16 %v2159_v3 }
 0x164   :  { %2042 = vmatpush3.bf16.msra.mxu1 %v2268_v19  ;;  %1854 = vmatprep.mubr.msk.f32.mxu1 %vm2196_vm1, %v2197_v15 }
 0x165   :  { %2043 = vmatprep.subr.bf16.mxu1 %v2195_v12  ;;  %v2411_v37 = vpack.c.bf16 %v2161_v36, %v2160_v9 }
 0x168   :  { %2045 = vmatpush3.bf16.msra.mxu1 %v2274_v23 }
 0x169   :  { %2046 = vmatprep.subr.bf16.mxu1 %v2195_v12 }
 0x236   :  { %v400_v40 = vpop.f32.mrb[6].mxu1 }
 0x237   :  { %v404_v41 = vadd.f32 %v400_v40, %v167_v39  ;;  %v1845_v42 = vpop.f32.mrb[7].mxu1 }
 0x239   :  { %2164 = vtanh.f32 %v404_v41 }
 0x243   :  { %v2165_v43 = vpop.eup %2164 }
 0x244   :  { %1855 = vmatmul.mubr.msk.f32.vlgmr.msra.gmra.mrb[8].mxu1 %vm46_vm0, %v2165_v43 }
 0x245   :  { %2048 = vmatpush3.bf16.msra.mxu1 %v2268_v19  ;;  %1865 = vmatprep.mubr.msk.f32.mxu1 %vm2196_vm1, %v2197_v15 }
 0x246   :  { %2049 = vmatprep.subr.bf16.mxu1 %v2195_v12 }
 0x249   :  { %2051 = vmatpush3.bf16.msra.mxu1 %v2274_v23 }
 0x24a   :  { %2058 = vmatprep.subr.bf16.mxu1 %v2195_v12 }
 0x317   :  { %v475_v49 = vpop.f32.mrb[8].mxu1 }
 0x318   :  { %v479_v50 = vadd.f32 %v475_v49, %v172_v48  ;;  %v1856_v51 = vpop.f32.mrb[9].mxu1 }
 0x31a   :  { %2166 = vtanh.f32 %v479_v50 }
 0x324   :  { %v2167_v52 = vpop.eup %2166 }
 0x325   :  { %1866 = vmatmul.mubr.msk.f32.vlgmr.msra.gmra.mrb[10].mxu1 %vm46_vm0, %v2167_v52  ;;  %v207_v52 = vadd.f32 %v2377_v5, %v2301_v31 }
 0x326   :  { %2060 = vmatpush3.bf16.msra.mxu1 %v2268_v19  ;;  %1887 = vmatprep.mubr.msk.f32.mxu1 %vm2196_vm1, %v2197_v15 }
 0x327   :  { %2061 = vmatprep.subr.bf16.mxu1 %v2195_v12 }
 0x32a   :  { %2063 = vmatpush3.bf16.msra.mxu1 %v2274_v23 }
 0x32b   :  { %2070 = vmatprep.subr.bf16.mxu1 %v2195_v12 }
 0x3f8   :  { %v550_v62 = vpop.f32.mrb[10].mxu1 }
 0x3f9   :  { %v554_v63 = vadd.f32 %v550_v62, %v177_v61  ;;  %v1867_v0 = vpop.f32.mrb[11].mxu1 }
 0x3fb   :  { %2168 = vtanh.f32 %v554_v63 }
 0x405   :  { %v2169_v1 = vpop.eup %2168 }
 0x406   :  { %1877 = vmatmul.mubr.msk.f32.vlgmr.msra.gmra.mrb[12].mxu0 %vm46_vm0, %v2169_v1 }
 0x407   :  { %2066 = vmatpush3.bf16.msra.mxu0 %v2268_v19  ;;  %1898 = vmatprep.mubr.msk.f32.mxu0 %vm2196_vm1, %v2197_v15 }
 0x408   :  { %2067 = vmatprep.subr.bf16.mxu0 %v2195_v12 }
 0x40b   :  { %2069 = vmatpush3.bf16.msra.mxu0 %v2274_v23 }
 0x40c   :  { %2076 = vmatprep.subr.bf16.mxu0 %v2195_v12 }
 0x4d9   :  { %v625_v11 = vpop.f32.mrb[12].mxu0 }
 0x4da   :  { %v629_v13 = vadd.f32 %v625_v11, %v182_v10  ;;  %v1878_v14 = vpop.f32.mrb[13].mxu0  ;;  %v222_v11 = vadd.f32 %v2301_v31, %v2292_v28 }
 0x4dc   :  { %2170 = vtanh.f32 %v629_v13 }
 0x4e6   :  { %v2171_v16 = vpop.eup %2170 }
 0x4e7   :  { %1888 = vmatmul.mubr.msk.f32.vlgmr.msra.gmra.mrb[12].mxu1 %vm46_vm0, %v2171_v16 }
 0x4e8   :  { %2072 = vmatpush3.bf16.msra.mxu1 %v2268_v19  ;;  %1909 = vmatprep.mubr.msk.f32.mxu1 %vm2196_vm1, %v2197_v15  ;;  %v192_v19 = vadd.f32 %v2301_v31, %v191_v4 }
 0x4e9   :  { %2073 = vmatprep.subr.bf16.mxu1 %v2195_v12 }
 0x4ec   :  { %2075 = vmatpush3.bf16.msra.mxu1 %v2274_v23 }
 0x4ed   :  { %2082 = vmatprep.subr.bf16.mxu1 %v2195_v12 }
 0x5ba   :  { %v700_v18 = vpop.f32.mrb[12].mxu1 }
 0x5bb   :  { %v704_v20 = vadd.f32 %v700_v18, %v187_v17  ;;  %v1889_v21 = vpop.f32.mrb[13].mxu1 }
 0x5bc   :  { %v19_v21 = vld [vmem:[%s2554_s1 + $0x18] sm:$0xff] }
 0x5bd   :  { %2172 = vtanh.f32 %v704_v20  ;;  %v18_v20 = vld [vmem:[%s2554_s1 + $0x8] sm:$0xff] }
 0x5c7   :  { %v2173_v22 = vpop.eup %2172 }
 0x5c8   :  { %1899 = vmatmul.mubr.msk.f32.vlgmr.msra.gmra.mrb[14].mxu0 %vm46_vm0, %v2173_v22  ;;  %v2124_v22 = vpack.c.bf16 %v19_v21, %v18_v20 }
 0x5c9   :  { %1920 = vmatprep.mubr.msk.f32.mxu0 %vm2196_vm1, %v2197_v15  ;;  %2078 = vmatpush3.bf16.msra.mxu0 %v2405_v35 }
 0x5ca   :  { %2079 = vmatprep.subr.bf16.mxu0 %v2195_v12 }
 0x5cd   :  { %2081 = vmatpush3.bf16.msra.mxu0 %v2411_v37 }
 0x5ce   :  { %2088 = vmatprep.subr.bf16.mxu0 %v2195_v12 }
 0x69b   :  { %v775_v23 = vpop.f32.mrb[14].mxu0 }
 0x69c   :  { %v779_v24 = vadd.f32 %v775_v23, %v192_v19  ;;  %v1900_v25 = vpop.f32.mrb[15].mxu0 }
 0x69d   :  { %v21_v25 = vld [vmem:[%s2554_s1 + $0x38] sm:$0xff] }
 0x69e   :  { %2174 = vtanh.f32 %v779_v24  ;;  %v20_v24 = vld [vmem:[%s2554_s1 + $0x28] sm:$0xff] }
 0x6a8   :  { %v2175_v27 = vpop.eup %2174 }
 0x6a9   :  { %1910 = vmatmul.mubr.msk.f32.vlgmr.msra.gmra.mrb[14].mxu1 %vm46_vm0, %v2175_v27  ;;  %v2128_v27 = vpack.c.bf16 %v21_v25, %v20_v24 }
 0x6aa   :  { %1931 = vmatprep.mubr.msk.f32.mxu1 %vm2196_vm1, %v2197_v15  ;;  %2084 = vmatpush3.bf16.msra.mxu1 %v2405_v35 }
 0x6ab   :  { %2085 = vmatprep.subr.bf16.mxu1 %v2195_v12 }
 0x6ae   :  { %2087 = vmatpush3.bf16.msra.mxu1 %v2411_v37 }
 0x6af   :  { %2094 = vmatprep.subr.bf16.mxu1 %v2195_v12 }
 0x77c   :  { %v850_v39 = vpop.f32.mrb[14].mxu1 }
 0x77d   :  { %v854_v40 = vadd.f32 %v850_v39, %v197_v38  ;;  %v1911_v41 = vpop.f32.mrb[15].mxu1  ;;  %v232_v38 = vadd.f32 %v2301_v31, %v2296_v30  ;;  %v237_v30 = vadd.f32 %v2294_v29, %v2301_v31 }
 0x77f   :  { %2176 = vtanh.f32 %v854_v40 }
 0x789   :  { %v2177_v42 = vpop.eup %2176 }
 0x78a   :  { %1921 = vmatmul.mubr.msk.f32.vlgmr.msra.gmra.mrb[16].mxu0 %vm46_vm0, %v2177_v42 }
 0x78b   :  { %2090 = vmatpush3.bf16.msra.mxu0 %v2405_v35  ;;  %1942 = vmatprep.mubr.msk.f32.mxu0 %vm2196_vm1, %v2197_v15 }
 0x78c   :  { %2091 = vmatprep.subr.bf16.mxu0 %v2195_v12 }
 0x78f   :  { %2093 = vmatpush3.bf16.msra.mxu0 %v2411_v37 }
 0x790   :  { %2100 = vmatprep.subr.bf16.mxu0 %v2195_v12 }
 0x85d   :  { %v937_v43 = vpop.f32.mrb[16].mxu0 }
 0x85e   :  { %942 = vrot.lane.b32.xlu0 %v937_v43, %s2198_s0  ;;  %v1922_v44 = vpop.f32.mrb[17].mxu0 }
 0x8d0   :  { %v943_v46 = vpop.permute.xlu0 %942 }
 0x8d1   :  { %v945_v47 = vadd.f32 %v943_v46, %v202_v45 }
 0x8d3   :  { %2178 = vtanh.f32 %v945_v47 }
 0x8dd   :  { %v2179_v48 = vpop.eup %2178 }
 0x8de   :  { %948 = vrot.lane.b32.xlu1 %v2179_v48, %s2199_s30 }
 0x950   :  { %v2429_v49 = vpop.permute.xlu1 %948 }
 0x951   :  { %1932 = vmatmul.mubr.msk.f32.vlgmr.msra.gmra.mrb[16].mxu1 %vm46_vm0, %v2429_v49 }
 0x952   :  { %2096 = vmatpush3.bf16.msra.mxu1 %v2405_v35  ;;  %1953 = vmatprep.mubr.msk.f32.mxu1 %vm2196_vm1, %v2197_v15 }
 0x953   :  { %2097 = vmatprep.subr.bf16.mxu1 %v2195_v12 }
 0x956   :  { %2099 = vmatpush3.bf16.msra.mxu1 %v2411_v37 }
 0x957   :  { %2106 = vmatprep.subr.bf16.mxu1 %v2195_v12 }
 0xa24   :  { %v1018_v50 = vpop.f32.mrb[16].mxu1 }
 0xa25   :  { %1023 = vrot.lane.b32.xlu0 %v1018_v50, %s2198_s0  ;;  %v1933_v51 = vpop.f32.mrb[17].mxu1 }
 0xa97   :  { %v1024_v53 = vpop.permute.xlu0 %1023 }
 0xa98   :  { %v1026_v54 = vadd.f32 %v1024_v53, %v207_v52 }
 0xa9a   :  { %2180 = vtanh.f32 %v1026_v54 }
 0xaa4   :  { %v2181_v55 = vpop.eup %2180 }
 0xaa5   :  { %1029 = vrot.lane.b32.xlu1 %v2181_v55, %s2199_s30 }
 0xb17   :  { %v2443_v56 = vpop.permute.xlu1 %1029 }
 0xb18   :  { %1943 = vmatmul.mubr.msk.f32.vlgmr.msra.gmra.mrb[18].mxu0 %vm46_vm0, %v2443_v56 }
 0xb19   :  { %2102 = vmatpush3.bf16.msra.mxu0 %v2405_v35  ;;  %1964 = vmatprep.mubr.msk.f32.mxu0 %vm2196_vm1, %v2197_v15 }
 0xb1a   :  { %2103 = vmatprep.subr.bf16.mxu0 %v2195_v12 }
 0xb1d   :  { %2105 = vmatpush3.bf16.msra.mxu0 %v2411_v37 }
 0xb1e   :  { %2112 = vmatprep.subr.bf16.mxu0 %v2195_v12 }
 0xbeb   :  { %v1099_v57 = vpop.f32.mrb[18].mxu0 }
 0xbec   :  { %1104 = vrot.lane.b32.xlu0 %v1099_v57, %s2198_s0  ;;  %v1944_v58 = vpop.f32.mrb[19].mxu0 }
 0xc5e   :  { %v1105_v60 = vpop.permute.xlu0 %1104 }
 0xc5f   :  { %v1107_v61 = vadd.f32 %v1105_v60, %v212_v59 }
 0xc61   :  { %2182 = vtanh.f32 %v1107_v61 }
 0xc6b   :  { %v2183_v62 = vpop.eup %2182 }
 0xc6c   :  { %1110 = vrot.lane.b32.xlu1 %v2183_v62, %s2199_s30 }
 0xcde   :  { %v1111_v63 = vpop.permute.xlu1 %1110 }
 0xcdf   :  { %1954 = vmatmul.mubr.msk.f32.vlgmr.msra.gmra.mrb[18].mxu1 %vm46_vm0, %v1111_v63 }
 0xce0   :  { %2108 = vmatpush3.bf16.msra.mxu1 %v2405_v35  ;;  %1975 = vmatprep.mubr.msk.f32.mxu1 %vm2196_vm1, %v2197_v15 }
 0xce1   :  { %2109 = vmatprep.subr.bf16.mxu1 %v2195_v12 }
 0xce4   :  { %2111 = vmatpush3.bf16.msra.mxu1 %v2411_v37 }
 0xce5   :  { %2118 = vmatprep.subr.bf16.mxu1 %v2195_v12 }
 0xdb2   :  { %v1180_v0 = vpop.f32.mrb[18].mxu1 }
 0xdb3   :  { %1185 = vrot.lane.b32.xlu0 %v1180_v0, %s2198_s0  ;;  %v1955_v1 = vpop.f32.mrb[19].mxu1 }
 0xe25   :  { %v1186_v4 = vpop.permute.xlu0 %1185 }
 0xe26   :  { %v1188_v5 = vadd.f32 %v1186_v4, %v217_v2 }
 0xe28   :  { %2184 = vtanh.f32 %v1188_v5 }
 0xe32   :  { %v2185_v6 = vpop.eup %2184 }
 0xe33   :  { %1191 = vrot.lane.b32.xlu1 %v2185_v6, %s2199_s30 }
 0xea5   :  { %v1192_v8 = vpop.permute.xlu1 %1191 }
 0xea6   :  { %1965 = vmatmul.mubr.msk.f32.vlgmr.msra.gmra.mrb[20].mxu0 %vm46_vm0, %v1192_v8 }
 0xea7   :  { %2114 = vmatpush3.bf16.msra.mxu0 %v2405_v35  ;;  %1986 = vmatprep.mubr.msk.f32.mxu0 %vm2196_vm1, %v2197_v15 }
 0xea8   :  { %2115 = vmatprep.subr.bf16.mxu0 %v2195_v12 }
 0xeab   :  { %2117 = vmatpush3.bf16.msra.mxu0 %v2411_v37 }
 0xeac   :  { %2125 = vmatprep.subr.bf16.mxu0 %v2124_v22 }
 0xf79   :  { %v1261_v10 = vpop.f32.mrb[20].mxu0 }
 0xf7a   :  { %1266 = vrot.lane.b32.xlu0 %v1261_v10, %s2198_s0  ;;  %v1966_v7 = vpop.f32.mrb[21].mxu0 }
 0xfec   :  { %v1267_v13 = vpop.permute.xlu0 %1266 }
 0xfed   :  { %v1269_v14 = vadd.f32 %v1267_v13, %v222_v11 }
 0xfef   :  { %2186 = vtanh.f32 %v1269_v14 }
 0xff9   :  { %v2187_v16 = vpop.eup %2186 }
 0xffa   :  { %1272 = vrot.lane.b32.xlu1 %v2187_v16, %s2199_s30 }
0x106c   :  { %v1273_v17 = vpop.permute.xlu1 %1272 }
0x106d   :  { %1976 = vmatmul.mubr.msk.f32.vlgmr.msra.gmra.mrb[20].mxu1 %vm46_vm0, %v1273_v17 }
0x106e   :  { %2120 = vmatpush3.bf16.msra.mxu1 %v2405_v35  ;;  %1997 = vmatprep.mubr.msk.f32.mxu1 %vm2196_vm1, %v2197_v15  ;;  %v227_v15 = vadd.f32 %v2290_v26, %v2301_v31 }
0x106f   :  { %2121 = vmatprep.subr.bf16.mxu1 %v2195_v12 }
0x1072   :  { %2123 = vmatpush3.bf16.msra.mxu1 %v2411_v37 }
0x1140   :  { %v1342_v18 = vpop.f32.mrb[20].mxu1 }
0x1141   :  { %1347 = vrot.lane.b32.xlu0 %v1342_v18, %s2198_s0  ;;  %v1977_v28 = vpop.f32.mrb[21].mxu1 }
0x11b3   :  { %v1348_v12 = vpop.permute.xlu0 %1347 }
0x11b4   :  { %v1350_v19 = vadd.f32 %v1348_v12, %v227_v15 }
0x11b6   :  { %2188 = vtanh.f32 %v1350_v19 }
0x11c0   :  { %v2189_v23 = vpop.eup %2188 }
0x11c1   :  { %1353 = vrot.lane.b32.xlu1 %v2189_v23, %s2199_s30 }
0x1233   :  { %v1354_v32 = vpop.permute.xlu1 %1353 }
0x1234   :  { %1987 = vmatmul.mubr.msk.f32.vlgmr.msra.gmra.mrb[22].mxu0 %vm46_vm0, %v1354_v32 }
0x1235   :  { %2127 = vmatpush3.bf16.msra.mxu0 %v2124_v22  ;;  %2008 = vmatprep.mubr.msk.f32.mxu0 %vm46_vm0, %v2429_v49 }
0x1236   :  { %2129 = vmatprep.subr.bf16.mxu0 %v2128_v27 }
0x1239   :  { %2131 = vmatpush3.bf16.msra.mxu0 %v2128_v27 }
0x123c   :  { %2009 = vmatmul.mubr.msk.f32.vlgmr.msra.gmra.mrb[24].mxu0 %vm46_vm0, %v2443_v56 }
0x123d   :  { %2011 = vmatprep.mubr.msk.f32.mxu0 %vm46_vm0, %v1111_v63 }
0x1240   :  { %2012 = vmatmul.mubr.msk.f32.gmra.mrb[26].mxu0 %vm46_vm0, %v1192_v8 }
0x1241   :  { %2014 = vmatprep.mubr.msk.f32.mxu0 %vm46_vm0, %v1273_v17 }
0x1244   :  { %2015 = vmatmul.mubr.msk.f32.gmra.mrb[28].mxu0 %vm46_vm0, %v1354_v32 }
0x1307   :  { %v1423_v26 = vpop.f32.mrb[22].mxu0 }
0x1308   :  { %1428 = vrot.lane.b32.xlu0 %v1423_v26, %s2198_s0  ;;  %v1988_v33 = vpop.f32.mrb[23].mxu0 }
0x130f   :  { %v2010_v34 = vpop.f32.mrb[24].mxu0 }
0x1310   :  { %v1588_v35 = vpop.f32.mrb[25].mxu0 }
0x1313   :  { %v2013_v3 = vpop.f32.mrb[26].mxu0 }
0x1314   :  { %v1598_v36 = vpop.f32.mrb[27].mxu0 }
0x1317   :  { %v2016_v9 = vpop.f32.mrb[28].mxu0 }
0x1318   :  { %v1608_v37 = vpop.f32.mrb[29].mxu0 }
0x137a   :  { %v1429_v39 = vpop.permute.xlu0 %1428 }
0x137b   :  { %v1431_v40 = vadd.f32 %v1429_v39, %v232_v38 }
0x137d   :  { %2190 = vtanh.f32 %v1431_v40 }
0x1387   :  { %v2191_v41 = vpop.eup %2190 }
0x1388   :  { %1434 = vrot.lane.b32.xlu1 %v2191_v41, %s2199_s30 }
0x13fa   :  { %v1435_v42 = vpop.permute.xlu1 %1434 }
0x13fb   :  { %1998 = vmatmul.mubr.msk.f32.vlgmr.msra.gmra.mrb[22].mxu1 %vm46_vm0, %v1435_v42  ;;  %2017 = vmatprep.mubr.msk.f32.mxu0 %vm46_vm0, %v1435_v42 }
0x14ce   :  { %v1504_v43 = vpop.f32.mrb[22].mxu1 }
0x14cf   :  { %1509 = vrot.lane.b32.xlu0 %v1504_v43, %s2198_s0  ;;  %v1999_v44 = vpop.f32.mrb[23].mxu1 }
0x14d3   :  { %1517 = vrot.lane.b32.xlu0 %v2301_v31, %s2194_s24 }
0x1541   :  { %v1510_v45 = vpop.permute.xlu0 %1509 }
0x1542   :  { %v1512_v46 = vadd.f32 %v1510_v45, %v237_v30 }
0x1544   :  { %2192 = vtanh.f32 %v1512_v46 }
0x1545   :  { %v1518_v47 = vpop.permute.xlu0 %1517 }
0x1546   :  { %v1589_v48 = vadd.f32 %v1588_v35, %v1518_v47  ;;  %v1594_v49 = vadd.f32 %v2010_v34, %v1518_v47  ;;  %v1599_v50 = vadd.f32 %v1598_v36, %v1518_v47  ;;  %v1604_v51 = vadd.f32 %v2013_v3, %v1518_v47 }
0x1547   :  { %v1609_v52 = vadd.f32 %v1608_v37, %v1518_v47  ;;  %v1614_v53 = vadd.f32 %v2016_v9, %v1518_v47 }
0x1548   :  { %1627 = vst.msk [vmem:[%s2557_s3] sm:$0xff] %vm46_vm0, %v1589_v48  ;;  %1628 = vst.msk [vmem:[%s2557_s3 + $0x8] sm:$0xff] %vm46_vm0, %v1594_v49 }
0x1549   :  { %1629 = vst.msk [vmem:[%s2557_s3 + $0x10] sm:$0xff] %vm46_vm0, %v1599_v50  ;;  %1630 = vst.msk [vmem:[%s2557_s3 + $0x18] sm:$0xff] %vm46_vm0, %v1604_v51 }
0x154a   :  { %1631 = vst.msk [vmem:[%s2557_s3 + $0x20] sm:$0xff] %vm46_vm0, %v1609_v52  ;;  %1632 = vst.msk [vmem:[%s2557_s3 + $0x28] sm:$0xff] %vm46_vm0, %v1614_v53 }
0x154e   :  { %v2193_v29 = vpop.eup %2192 }
0x154f   :  { %1515 = vrot.lane.b32.xlu1 %v2193_v29, %s2199_s30 }
0x15c1   :  { %v1516_v31 = vpop.permute.xlu1 %1515 }
0x15c2   :  { %2018 = vmatmul.mubr.msk.f32.gmra.mrb[30].mxu0 %vm46_vm0, %v1516_v31 }
0x1695   :  { %v2019_v54 = vpop.f32.mrb[30].mxu0 }
0x1696   :  { %v1624_v55 = vadd.f32 %v2019_v54, %v1518_v47  ;;  %v1618_v56 = vpop.f32.mrb[31].mxu0 }
0x1697   :  { %v1619_v57 = vadd.f32 %v1618_v56, %v1518_v47 }
0x1698   :  { %1634 = vst.msk [vmem:[%s2557_s3 + $0x38] sm:$0xff] %vm46_vm0, %v1624_v55 }
0x1699   :  { %1633 = vst.msk [vmem:[%s2557_s3 + $0x30] sm:$0xff] %vm46_vm0, %v1619_v57 }

</bundles_post_ra>
